<compile_context>
chip_gen: v7x
topology: tpu7x:2x2x1
jax: 0.10.0
libtpu: 0.0.40
codegen_flags: <defaults>
</compile_context>

<pallas_src>
import math
from functools import partial

import jax
import jax.numpy as jnp
import numpy as np
from jax import lax
from jax.experimental import pallas as pl
from jax.experimental.pallas import tpu as pltpu


# ---------------------------------------------------------------------------
# helpers
# ---------------------------------------------------------------------------
def _vmem_limit(working_set_bytes):
    """Explicit scoped-VMEM budget: 2x working set (double buffering) plus
    margin for compiler temporaries, floored at the common 32 MiB scoped
    default and capped at v7x's 64 MiB physical VMEM."""
    need = int(2 * working_set_bytes) + (4 << 20)
    return int(max(32 << 20, min(need, 64 << 20)))


def _pick_k_tile(dim, preferred=512):
    """Reduction tile: a multiple of 128 that divides `dim` exactly (so no
    padded garbage enters the accumulation); otherwise fall back to the full
    dimension (single reduction step)."""
    for cand in (preferred, 512, 384, 256, 128):
        if cand % 128 == 0 and cand <= dim and dim % cand == 0:
            return cand
    return dim


# ---------------------------------------------------------------------------
# Kernel 1: fused Q/K/V projections, grid over (batch, sequence tiles)
# ---------------------------------------------------------------------------
def _qkv_proj_kernel(q_ref, k_ref, v_ref, wq_ref, wk_ref, wv_ref,
                     qo_ref, ko_ref, vo_ref, *, mxu_dtype):
    # Weights arrive pre-cast to the MXU dtype (and wq pre-scaled by
    # 1/sqrt(d)): no per-grid-step cast of the VMEM-resident weight blocks
    # and no separate score-scaling pass later.
    qo_ref[0] = jnp.dot(q_ref[0].astype(mxu_dtype), wq_ref[...],
                        preferred_element_type=jnp.float32).astype(qo_ref.dtype)
    ko_ref[0] = jnp.dot(k_ref[0].astype(mxu_dtype), wk_ref[...],
                        preferred_element_type=jnp.float32).astype(ko_ref.dtype)
    vo_ref[0] = jnp.dot(v_ref[0].astype(mxu_dtype), wv_ref[...],
                        preferred_element_type=jnp.float32).astype(vo_ref.dtype)


def qkv_projection(queries, keys, values, wq, wk, wv, *,
                   mxu_dtype, out_dtype, seq_tile=256):
    B, Qn, Fq = queries.shape
    _, Kn, Fk = keys.shape
    _, Vn, Fv = values.shape
    H = wq.shape[1]

    tsq, tsk, tsv = min(seq_tile, Qn), min(seq_tile, Kn), min(seq_tile, Vn)
    nq, nk, nv = pl.cdiv(Qn, tsq), pl.cdiv(Kn, tsk), pl.cdiv(Vn, tsv)
    ns = max(nq, nk, nv)

    def seq_map(n_tiles):
        if n_tiles == ns:
            return lambda b, s: (b, s, 0)
        # Shorter input (cross-attention with Qn != Kn): clamp so its last
        # block just stays resident; the repeated rewrites are idempotent.
        return lambda b, s: (b, jnp.minimum(s, n_tiles - 1), 0)

    qmap, kmap, vmap = seq_map(nq), seq_map(nk), seq_map(nv)
    wmap = lambda b, s: (0, 0)          # constant index -> VMEM-resident weights

    in_isz = np.dtype(queries.dtype).itemsize
    w_isz = np.dtype(wq.dtype).itemsize
    o_isz = np.dtype(out_dtype).itemsize
    working_set = ((tsq * Fq + tsk * Fk + tsv * Fv) * in_isz
                   + (Fq + Fk + Fv) * H * w_isz
                   + (tsq + tsk + tsv) * H * o_isz
                   + (tsq + tsk + tsv) * H * 4)     # f32 matmul results pre-cast

    flops = 2 * B * (Qn * Fq + Kn * Fk + Vn * Fv) * H
    bytes_accessed = ((B * Qn * Fq + B * Kn * Fk + B * Vn * Fv) * in_isz
                      + (Fq + Fk + Fv) * H * w_isz
                      + B * (Qn + Kn + Vn) * H * o_isz)

    return pl.pallas_call(
        partial(_qkv_proj_kernel, mxu_dtype=mxu_dtype),
        out_shape=(jax.ShapeDtypeStruct((B, Qn, H), out_dtype),
                   jax.ShapeDtypeStruct((B, Kn, H), out_dtype),
                   jax.ShapeDtypeStruct((B, Vn, H), out_dtype)),
        grid=(B, ns),
        in_specs=[
            pl.BlockSpec((1, tsq, Fq), qmap),
            pl.BlockSpec((1, tsk, Fk), kmap),
            pl.BlockSpec((1, tsv, Fv), vmap),
            pl.BlockSpec((Fq, H), wmap),
            pl.BlockSpec((Fk, H), wmap),
            pl.BlockSpec((Fv, H), wmap),
        ],
        out_specs=(
            pl.BlockSpec((1, tsq, H), qmap),
            pl.BlockSpec((1, tsk, H), kmap),
            pl.BlockSpec((1, tsv, H), vmap),
        ),
        compiler_params=pltpu.CompilerParams(
            dimension_semantics=("parallel",
                                 "parallel" if nq == nk == nv else "arbitrary"),
            vmem_limit_bytes=_vmem_limit(working_set)),
        cost_estimate=pl.CostEstimate(flops=int(flops), transcendentals=0,
                                      bytes_accessed=int(bytes_accessed)),
    )(queries, keys, values, wq, wk, wv)


# ---------------------------------------------------------------------------
# Kernel 2: flash-style masked attention (online softmax over K tiles)
# ---------------------------------------------------------------------------
def _flash_attn_kernel(*refs, has_mask, pad_k, tk, kn, approx_recip, mxu_dtype):
    if has_mask:
        vlen_ref, q_ref, k_ref, v_ref, o_ref, m_sc, l_sc, acc_sc = refs
    else:
        q_ref, k_ref, v_ref, o_ref, m_sc, l_sc, acc_sc = refs

    ki = pl.program_id(2)

    @pl.when(ki == 0)
    def _():
        m_sc[...] = jnp.full_like(m_sc, -jnp.inf)
        l_sc[...] = jnp.zeros_like(l_sc)
        acc_sc[...] = jnp.zeros_like(acc_sc)

    q = q_ref[...].astype(mxu_dtype)    # (h, tq, d); already carries 1/sqrt(d)
    k = k_ref[...].astype(mxu_dtype)    # (h, tk, d)
    # Batched over heads, contracting the feature dims directly (no K
    # transpose / relayout), f32 accumulation on the MXU.
    s = lax.dot_general(q, k, (((2,), (2,)), ((0,), (0,))),
                        preferred_element_type=jnp.float32)   # (h, tq, tk) f32

    if has_mask or pad_k:
        col = ki * tk + lax.broadcasted_iota(jnp.int32, s.shape, 2)
    if has_mask:
        # same valid_len for all heads of a batch (repeat_interleave semantics)
        vlen = vlen_ref[pl.program_id(0)]
        s = jnp.where(col >= vlen, jnp.float32(-1000000.0), s)
    if pad_k:
        s = jnp.where(col >= kn, jnp.float32(-1000000.0), s)

    # online softmax update (f32 on the VPU)
    m_prev = m_sc[...]
    m_new = jnp.maximum(m_prev, jnp.max(s, axis=-1, keepdims=True))
    alpha = jnp.exp(m_prev - m_new)
    p = jnp.exp(s - m_new)
    if pad_k:
        p = jnp.where(col >= kn, jnp.float32(0.0), p)   # never weight K padding
    l_sc[...] = alpha * l_sc[...] + jnp.sum(p, axis=-1, keepdims=True)
    acc_sc[...] = alpha * acc_sc[...] + lax.dot_general(
        p.astype(mxu_dtype), v_ref[...].astype(mxu_dtype),
        (((2,), (1,)), ((0,), (0,))),
        preferred_element_type=jnp.float32)              # (h, tq, d) f32
    m_sc[...] = m_new

    @pl.when(ki == pl.num_programs(2) - 1)
    def _():
        # TODO(synk): nn.Dropout on attention weights is identity (eval mode).
        if approx_recip:
            inv = pl.reciprocal(l_sc[...], approx=True)   # EUP slot (perf path)
            o_ref[...] = (acc_sc[...] * inv).astype(o_ref.dtype)
        else:
            o_ref[...] = (acc_sc[...] / l_sc[...]).astype(o_ref.dtype)


def flash_attention(q_h, k_h, v_h, valid_lens_b, num_heads, *,
                    mxu_dtype, out_dtype, q_tile=128, k_tile=128,
                    approx_recip=True):
    """q_h: (B*h, Qn, d) (already scaled by 1/sqrt(d)), k_h/v_h: (B*h, Kn, d),
    valid_lens_b: (B,) int32 or None."""
    BH, Qn, d = q_h.shape
    _, Kn, _ = k_h.shape
    h = num_heads
    B = BH // h

    tq = min(q_tile, Qn)
    tk = min(k_tile, Kn)
    nq = pl.cdiv(Qn, tq)
    nk = pl.cdiv(Kn, tk)
    pad_k = (Kn % tk) != 0
    has_mask = valid_lens_b is not None

    kernel = partial(_flash_attn_kernel, has_mask=has_mask, pad_k=pad_k,
                     tk=tk, kn=Kn, approx_recip=approx_recip,
                     mxu_dtype=mxu_dtype)

    # *_ absorbs the scalar-prefetch ref when the mask is present
    def qmap(b, qi, ki, *_):
        return (b, qi, 0)

    def kmap(b, qi, ki, *_):
        return (b, ki, 0)

    in_isz = np.dtype(q_h.dtype).itemsize
    o_isz = np.dtype(out_dtype).itemsize
    working_set = (h * tq * d * in_isz + 2 * h * tk * d * in_isz
                   + h * tq * d * o_isz
                   + h * tq * (d + 2) * 4        # f32 acc / m / l scratch
                   + 2 * h * tq * tk * 4)        # f32 score/p temporaries

    flops = 4 * BH * Qn * Kn * d + 8 * BH * Qn * Kn
    transc = 2 * BH * Qn * Kn
    bytes_accessed = ((BH * Qn * d + 2 * BH * Kn * d) * in_isz
                      + BH * Qn * d * o_isz)

    grid_spec = pltpu.PrefetchScalarGridSpec(
        num_scalar_prefetch=1 if has_mask else 0,
        grid=(B, nq, nk),                        # reduction (K) axis last
        in_specs=[
            pl.BlockSpec((h, tq, d), qmap),
            pl.BlockSpec((h, tk, d), kmap),
            pl.BlockSpec((h, tk, d), kmap),
        ],
        out_specs=pl.BlockSpec((h, tq, d), qmap),
        scratch_shapes=[
            pltpu.VMEM((h, tq, 1), jnp.float32),     # running max
            pltpu.VMEM((h, tq, 1), jnp.float32),     # running denominator
            pltpu.VMEM((h, tq, d), jnp.float32),     # output accumulator
        ])

    args = (valid_lens_b, q_h, k_h, v_h) if has_mask else (q_h, k_h, v_h)
    return pl.pallas_call(
        kernel,
        out_shape=jax.ShapeDtypeStruct((BH, Qn, d), out_dtype),
        grid_spec=grid_spec,
        compiler_params=pltpu.CompilerParams(
            dimension_semantics=("parallel", "parallel", "arbitrary"),
            vmem_limit_bytes=_vmem_limit(working_set)),
        cost_estimate=pl.CostEstimate(flops=int(flops),
                                      transcendentals=int(transc),
                                      bytes_accessed=int(bytes_accessed)),
    )(*args)


# ---------------------------------------------------------------------------
# Kernel 3: tiled linear (output projection) with a K-reduction grid axis
# ---------------------------------------------------------------------------
def _linear_kernel(x_ref, w_ref, o_ref, acc_ref, *, mxu_dtype):
    @pl.when(pl.program_id(2) == 0)
    def _():
        acc_ref[...] = jnp.zeros_like(acc_ref)

    acc_ref[...] += jnp.dot(x_ref[...].astype(mxu_dtype), w_ref[...],
                            preferred_element_type=jnp.float32)

    @pl.when(pl.program_id(2) == pl.num_programs(2) - 1)
    def _():
        o_ref[...] = acc_ref[...].astype(o_ref.dtype)


def linear_no_bias(x2d, w, *, mxu_dtype, out_dtype, tm=128, tn=128, tk=512):
    """x2d: (N, F) @ w: (F, H) -> (N, H).  M/N 'parallel' tiles, K-reduction
    axis last/'arbitrary' with an f32 VMEM accumulator (pl.when init/store)."""
    N, F = x2d.shape
    H = w.shape[1]
    tm = min(tm, N)
    tn = min(tn, H)
    tk = _pick_k_tile(F, preferred=tk)

    in_isz = np.dtype(x2d.dtype).itemsize
    w_isz = np.dtype(w.dtype).itemsize
    o_isz = np.dtype(out_dtype).itemsize
    working_set = (tm * tk * in_isz + tk * tn * w_isz + tm * tn * (o_isz + 4))

    flops = 2 * N * F * H
    bytes_accessed = N * F * in_isz + F * H * w_isz + N * H * o_isz

    return pl.pallas_call(
        partial(_linear_kernel, mxu_dtype=mxu_dtype),
        out_shape=jax.ShapeDtypeStruct((N, H), out_dtype),
        grid=(pl.cdiv(N, tm), pl.cdiv(H, tn), F // tk),
        in_specs=[
            pl.BlockSpec((tm, tk), lambda i, j, k: (i, k)),
            pl.BlockSpec((tk, tn), lambda i, j, k: (k, j)),
        ],
        out_specs=pl.BlockSpec((tm, tn), lambda i, j, k: (i, j)),
        scratch_shapes=[pltpu.VMEM((tm, tn), jnp.float32)],
        compiler_params=pltpu.CompilerParams(
            dimension_semantics=("parallel", "parallel", "arbitrary"),
            vmem_limit_bytes=_vmem_limit(working_set)),
        cost_estimate=pl.CostEstimate(flops=int(flops), transcendentals=0,
                                      bytes_accessed=int(bytes_accessed)),
    )(x2d, w)


# ---------------------------------------------------------------------------
# MultiHeadAttention forward (Pallas-backed)
# ---------------------------------------------------------------------------
def multi_head_attention(queries, keys, values, valid_lens, params,
                         num_hiddens, num_heads, *, mxu_dtype=jnp.bfloat16):
    """
    queries: (B, Q, Fq)   keys: (B, K, Fk)   values: (B, K, Fv)
    valid_lens: (B,) int or None
    params: dict with 'wq','wk','wv','wo' stored as (in_features, out_features)
    returns: (B, Q, num_hiddens)
    """
    B, Qn, _ = queries.shape
    _, Kn, _ = keys.shape
    _, Vn, _ = values.shape
    H, h = num_hiddens, num_heads
    d = H // h
    inter_dtype = mxu_dtype       # narrow intermediates halve HBM traffic (bf16 path)

    # One-time weight prep (outside every grid loop): fold the 1/sqrt(d)
    # attention scale into wq and pre-cast all weights to the MXU dtype.
    wq = (params["wq"] * (1.0 / math.sqrt(d))).astype(mxu_dtype)
    wk = params["wk"].astype(mxu_dtype)
    wv = params["wv"].astype(mxu_dtype)
    wo = params["wo"].astype(mxu_dtype)

    qp, kp, vp = qkv_projection(queries, keys, values, wq, wk, wv,
                                mxu_dtype=mxu_dtype, out_dtype=inter_dtype)

    # raw row-major head reshape, exactly as the PyTorch module does
    # (free: pure row-major relabel of the HBM buffers)
    q_h = qp.reshape(B * h, Qn, d)
    k_h = kp.reshape(B * h, Kn, d)
    v_h = vp.reshape(B * h, Vn, d)

    vlens = None if valid_lens is None else valid_lens.astype(jnp.int32)

    ctx = flash_attention(
        q_h, k_h, v_h, vlens, h, mxu_dtype=mxu_dtype, out_dtype=inter_dtype,
        # exact division in the f32 check path; EUP approx recip on the perf path
        approx_recip=(mxu_dtype != jnp.float32))

    # raw reshape back to (B*Q, H) (free), then the tiled output projection
    out = linear_no_bias(ctx.reshape(B * Qn, H), wo,
                         mxu_dtype=mxu_dtype, out_dtype=queries.dtype)
    return out.reshape(B, Qn, H)


# ---------------------------------------------------------------------------
# Pure-JAX f32 reference (for correctness check)
# ---------------------------------------------------------------------------
def reference_mha(queries, keys, values, valid_lens, params, num_hiddens, num_heads):
    B, Qn, _ = queries.shape
    _, Kn, _ = keys.shape
    H, h = num_hiddens, num_heads
    d = H // h
    q = (queries @ params["wq"]).reshape(-1, Qn, d)
    k = (keys @ params["wk"]).reshape(-1, Kn, d)
    v = (values @ params["wv"]).reshape(-1, Kn, d)
    scores = jnp.einsum("bqd,bkd->bqk", q, k) / math.sqrt(d)
    if valid_lens is not None:
        vl = jnp.repeat(valid_lens.astype(jnp.float32), h, axis=0)
        col = jnp.arange(Kn, dtype=jnp.float32)[None, None, :]
        scores = jnp.where(col >= vl[:, None, None], -1000000.0, scores)
    w = jax.nn.softmax(scores, axis=-1)
    out = jnp.einsum("bqk,bkd->bqd", w, v).reshape(B, Qn, H)
    return out @ params["wo"]


# ---------------------------------------------------------------------------
# main
# ---------------------------------------------------------------------------
if __name__ == "__main__":
    B = 2
    num_queries = 8
    num_keys = 8
    query_features = 16
    key_features = 16
    value_features = 16
    num_hiddens = 32
    num_heads = 4

    key = jax.random.PRNGKey(0)
    kq, kk, kv, kwq, kwk, kwv, kwo = jax.random.split(key, 7)

    queries = jax.random.normal(kq, (B, num_queries, query_features), jnp.float32)
    keys = jax.random.normal(kk, (B, num_keys, key_features), jnp.float32)
    values = jax.random.normal(kv, (B, num_keys, value_features), jnp.float32)
    valid_lens = jnp.array([5, 8], dtype=jnp.int32)

    params = {
        "wq": 0.1 * jax.random.normal(kwq, (query_features, num_hiddens), jnp.float32),
        "wk": 0.1 * jax.random.normal(kwk, (key_features, num_hiddens), jnp.float32),
        "wv": 0.1 * jax.random.normal(kwv, (value_features, num_hiddens), jnp.float32),
        "wo": 0.1 * jax.random.normal(kwo, (num_hiddens, num_hiddens), jnp.float32),
    }

    ref = reference_mha(queries, keys, values, valid_lens, params,
                        num_hiddens, num_heads)

    # 1) exact-logic check: f32 MXU operands, exact softmax normalization
    run_f32 = jax.jit(lambda q, k, v, vl, p: multi_head_attention(
        q, k, v, vl, p, num_hiddens, num_heads, mxu_dtype=jnp.float32))
    out_f32 = jax.block_until_ready(run_f32(queries, keys, values, valid_lens, params))
    np.testing.assert_allclose(np.asarray(out_f32), np.asarray(ref),
                               rtol=2e-3, atol=2e-3)

    # 2) performance path: bf16 MXU operands + bf16 intermediates, f32 accum,
    #    approximate EUP reciprocal in the softmax normalization
    run_bf16 = jax.jit(lambda q, k, v, vl, p: multi_head_attention(
        q, k, v, vl, p, num_hiddens, num_heads, mxu_dtype=jnp.bfloat16))
    out_bf16 = jax.block_until_ready(run_bf16(queries, keys, values, valid_lens, params))
    np.testing.assert_allclose(np.asarray(out_bf16), np.asarray(ref),
                               rtol=3e-2, atol=2e-2)

    # 3) no-mask branch (valid_lens=None): static has_mask=False kernel path
    ref_nm = reference_mha(queries, keys, values, None, params,
                           num_hiddens, num_heads)
    run_nm = jax.jit(lambda q, k, v, p: multi_head_attention(
        q, k, v, None, p, num_hiddens, num_heads, mxu_dtype=jnp.float32))
    out_nm = jax.block_until_ready(run_nm(queries, keys, values, params))
    np.testing.assert_allclose(np.asarray(out_nm), np.asarray(ref_nm),
                               rtol=2e-3, atol=2e-3)

    print("KERNEL_OK")
</pallas_src>

<mosaic_0001>
module attributes {stable_mosaic.version = 11 : i64} {
  func.func @_flash_attn_kernel(%arg0: i32, %arg1: i32, %arg2: i32, %arg3: memref<2xi32, #tpu.memory_space<smem>>, %arg4: memref<4x8x8xf32, #tpu.memory_space<vmem>>, %arg5: memref<4x8x8xf32, #tpu.memory_space<vmem>>, %arg6: memref<4x8x8xf32, #tpu.memory_space<vmem>>, %arg7: memref<4x8x8xf32, #tpu.memory_space<vmem>>, %arg8: memref<4x8x1xf32, #tpu.memory_space<vmem>>, %arg9: memref<4x8x1xf32, #tpu.memory_space<vmem>>, %arg10: memref<4x8x8xf32, #tpu.memory_space<vmem>>) attributes {dimension_semantics = [#tpu.dimension_semantics<parallel>, #tpu.dimension_semantics<parallel>, #tpu.dimension_semantics<arbitrary>], iteration_bounds = array<i64: 2, 1, 1>, scalar_prefetch = 1 : i64, scratch_operands = 3 : i64, tpu.core_type = #tpu.core_type<tc>, window_params = [{transform_indices = @transform_0, window_bounds = array<i64: 4, 8, 8>}, {transform_indices = @transform_1, window_bounds = array<i64: 4, 8, 8>}, {transform_indices = @transform_2, window_bounds = array<i64: 4, 8, 8>}, {transform_indices = @transform_3, window_bounds = array<i64: 4, 8, 8>}]} {
    %c0_i32 = arith.constant 0 : i32
    %0 = arith.cmpi eq, %arg2, %c0_i32 : i32
    %1 = arith.extui %0 : i1 to i32
    %c0_i32_0 = arith.constant 0 : i32
    %2 = arith.cmpi ne, %1, %c0_i32_0 : i32
    scf.if %2 {
      %cst_33 = arith.constant 0xFF800000 : f32
      %42 = vector.broadcast %cst_33 : f32 to vector<4x8x1xf32>
      %c0_34 = arith.constant 0 : index
      %c0_35 = arith.constant 0 : index
      %c0_36 = arith.constant 0 : index
      %43 = vector.load %arg8[%c0_34, %c0_35, %c0_36] : memref<4x8x1xf32, #tpu.memory_space<vmem>>, vector<4x8x1xf32>
      tpu.vector_store %arg8[%c0_34, %c0_35, %c0_36], %42 {strides = array<i32>} : memref<4x8x1xf32, #tpu.memory_space<vmem>>, vector<4x8x1xf32>,
      %cst_37 = arith.constant 0.000000e+00 : f32
      %44 = vector.broadcast %cst_37 : f32 to vector<4x8x1xf32>
      %c0_38 = arith.constant 0 : index
      %c0_39 = arith.constant 0 : index
      %c0_40 = arith.constant 0 : index
      %45 = vector.load %arg9[%c0_38, %c0_39, %c0_40] : memref<4x8x1xf32, #tpu.memory_space<vmem>>, vector<4x8x1xf32>
      tpu.vector_store %arg9[%c0_38, %c0_39, %c0_40], %44 {strides = array<i32>} : memref<4x8x1xf32, #tpu.memory_space<vmem>>, vector<4x8x1xf32>,
      %cst_41 = arith.constant 0.000000e+00 : f32
      %46 = vector.broadcast %cst_41 : f32 to vector<4x8x8xf32>
      %c0_42 = arith.constant 0 : index
      %c0_43 = arith.constant 0 : index
      %c0_44 = arith.constant 0 : index
      %47 = vector.load %arg10[%c0_42, %c0_43, %c0_44] : memref<4x8x8xf32, #tpu.memory_space<vmem>>, vector<4x8x8xf32>
      tpu.vector_store %arg10[%c0_42, %c0_43, %c0_44], %46 {strides = array<i32>} : memref<4x8x8xf32, #tpu.memory_space<vmem>>, vector<4x8x8xf32>,
    } else {
    }
    %c0 = arith.constant 0 : index
    %c0_1 = arith.constant 0 : index
    %c0_2 = arith.constant 0 : index
    %3 = vector.load %arg4[%c0, %c0_1, %c0_2] : memref<4x8x8xf32, #tpu.memory_space<vmem>>, vector<4x8x8xf32>
    %c0_3 = arith.constant 0 : index
    %c0_4 = arith.constant 0 : index
    %c0_5 = arith.constant 0 : index
    %4 = vector.load %arg5[%c0_3, %c0_4, %c0_5] : memref<4x8x8xf32, #tpu.memory_space<vmem>>, vector<4x8x8xf32>
    %cst = arith.constant dense<0.000000e+00> : vector<4x8x8xf32>
    %5 = tpu.matmul %3, %4, %cst {dimension_numbers = #tpu.dot_dimension_numbers<[2], [2], [1], [1], [0, 0, 0, 1, 1, 1], [0], [0]>} : vector<4x8x8xf32>, vector<4x8x8xf32>, vector<4x8x8xf32> -> vector<4x8x8xf32>
    %c8_i32 = arith.constant 8 : i32
    %6 = arith.muli %arg2, %c8_i32 : i32
    %7 = tpu.iota {dimensions = array<i32: 2>} : vector<4x8x8xi32>
    %8 = vector.broadcast %6 : i32 to vector<4x8x8xi32>
    %9 = arith.addi %8, %7 : vector<4x8x8xi32>
    %10 = arith.index_cast %arg0 : i32 to index
    %11 = memref.load %arg3[%10] : memref<2xi32, #tpu.memory_space<smem>>
    %12 = vector.broadcast %11 : i32 to vector<4x8x8xi32>
    %13 = arith.cmpi sge, %9, %12 : vector<4x8x8xi32>
    %cst_6 = arith.constant -1.000000e+06 : f32
    %14 = vector.broadcast %cst_6 : f32 to vector<4x8x8xf32>
    %15 = arith.select %13, %14, %5 : vector<4x8x8xi1>, vector<4x8x8xf32>
    %c0_7 = arith.constant 0 : index
    %c0_8 = arith.constant 0 : index
    %c0_9 = arith.constant 0 : index
    %16 = vector.load %arg8[%c0_7, %c0_8, %c0_9] : memref<4x8x1xf32, #tpu.memory_space<vmem>>, vector<4x8x1xf32>
    %cst_10 = arith.constant dense<0xFF800000> : vector<4x8xf32>
    %17 = vector.multi_reduction <maximumf>, %15, %cst_10 [2] : vector<4x8x8xf32> to vector<4x8xf32>
    %18 = vector.shape_cast %17 : vector<4x8xf32> to vector<4x8x1xf32>
    %19 = arith.maximumf %16, %18 : vector<4x8x1xf32>
    %20 = arith.subf %16, %19 : vector<4x8x1xf32>
    %21 = math.exp %20 : vector<4x8x1xf32>
    %22 = vector.broadcast %19 : vector<4x8x1xf32> to vector<4x8x8xf32>
    %23 = arith.subf %15, %22 : vector<4x8x8xf32>
    %24 = math.exp %23 : vector<4x8x8xf32>
    %c0_11 = arith.constant 0 : index
    %c0_12 = arith.constant 0 : index
    %c0_13 = arith.constant 0 : index
    %25 = vector.load %arg9[%c0_11, %c0_12, %c0_13] : memref<4x8x1xf32, #tpu.memory_space<vmem>>, vector<4x8x1xf32>
    %26 = arith.mulf %21, %25 : vector<4x8x1xf32>
    %cst_14 = arith.constant dense<0.000000e+00> : vector<4x8xf32>
    %27 = vector.multi_reduction <add>, %24, %cst_14 [2] : vector<4x8x8xf32> to vector<4x8xf32>
    %28 = vector.shape_cast %27 : vector<4x8xf32> to vector<4x8x1xf32>
    %29 = arith.addf %26, %28 : vector<4x8x1xf32>
    %c0_15 = arith.constant 0 : index
    %c0_16 = arith.constant 0 : index
    %c0_17 = arith.constant 0 : index
    %30 = vector.load %arg9[%c0_15, %c0_16, %c0_17] : memref<4x8x1xf32, #tpu.memory_space<vmem>>, vector<4x8x1xf32>
    tpu.vector_store %arg9[%c0_15, %c0_16, %c0_17], %29 {strides = array<i32>} : memref<4x8x1xf32, #tpu.memory_space<vmem>>, vector<4x8x1xf32>,
    %c0_18 = arith.constant 0 : index
    %c0_19 = arith.constant 0 : index
    %c0_20 = arith.constant 0 : index
    %31 = vector.load %arg10[%c0_18, %c0_19, %c0_20] : memref<4x8x8xf32, #tpu.memory_space<vmem>>, vector<4x8x8xf32>
    %32 = vector.broadcast %21 : vector<4x8x1xf32> to vector<4x8x8xf32>
    %33 = arith.mulf %32, %31 : vector<4x8x8xf32>
    %c0_21 = arith.constant 0 : index
    %c0_22 = arith.constant 0 : index
    %c0_23 = arith.constant 0 : index
    %34 = vector.load %arg6[%c0_21, %c0_22, %c0_23] : memref<4x8x8xf32, #tpu.memory_space<vmem>>, vector<4x8x8xf32>
    %cst_24 = arith.constant dense<0.000000e+00> : vector<4x8x8xf32>
    %35 = tpu.matmul %24, %34, %cst_24 {dimension_numbers = #tpu.dot_dimension_numbers<[2], [1], [1], [2], [0, 0, 0, 1, 1, 2], [0], [0]>} : vector<4x8x8xf32>, vector<4x8x8xf32>, vector<4x8x8xf32> -> vector<4x8x8xf32>
    %36 = arith.addf %33, %35 : vector<4x8x8xf32>
    %c0_25 = arith.constant 0 : index
    %c0_26 = arith.constant 0 : index
    %c0_27 = arith.constant 0 : index
    %37 = vector.load %arg10[%c0_25, %c0_26, %c0_27] : memref<4x8x8xf32, #tpu.memory_space<vmem>>, vector<4x8x8xf32>
    tpu.vector_store %arg10[%c0_25, %c0_26, %c0_27], %36 {strides = array<i32>} : memref<4x8x8xf32, #tpu.memory_space<vmem>>, vector<4x8x8xf32>,
    %c0_28 = arith.constant 0 : index
    %c0_29 = arith.constant 0 : index
    %c0_30 = arith.constant 0 : index
    %38 = vector.load %arg8[%c0_28, %c0_29, %c0_30] : memref<4x8x1xf32, #tpu.memory_space<vmem>>, vector<4x8x1xf32>
    tpu.vector_store %arg8[%c0_28, %c0_29, %c0_30], %19 {strides = array<i32>} : memref<4x8x1xf32, #tpu.memory_space<vmem>>, vector<4x8x1xf32>,
    %c0_i32_31 = arith.constant 0 : i32
    %39 = arith.cmpi eq, %arg2, %c0_i32_31 : i32
    %40 = arith.extui %39 : i1 to i32
    %c0_i32_32 = arith.constant 0 : i32
    %41 = arith.cmpi ne, %40, %c0_i32_32 : i32
    scf.if %41 {
      %c0_33 = arith.constant 0 : index
      %c0_34 = arith.constant 0 : index
      %c0_35 = arith.constant 0 : index
      %42 = vector.load %arg10[%c0_33, %c0_34, %c0_35] : memref<4x8x8xf32, #tpu.memory_space<vmem>>, vector<4x8x8xf32>
      %c0_36 = arith.constant 0 : index
      %c0_37 = arith.constant 0 : index
      %c0_38 = arith.constant 0 : index
      %43 = vector.load %arg9[%c0_36, %c0_37, %c0_38] : memref<4x8x1xf32, #tpu.memory_space<vmem>>, vector<4x8x1xf32>
      %44 = vector.broadcast %43 : vector<4x8x1xf32> to vector<4x8x8xf32>
      %45 = arith.divf %42, %44 : vector<4x8x8xf32>
      %c0_39 = arith.constant 0 : index
      %c0_40 = arith.constant 0 : index
      %c0_41 = arith.constant 0 : index
      %46 = vector.load %arg7[%c0_39, %c0_40, %c0_41] : memref<4x8x8xf32, #tpu.memory_space<vmem>>, vector<4x8x8xf32>
      tpu.vector_store %arg7[%c0_39, %c0_40, %c0_41], %45 {strides = array<i32>} : memref<4x8x8xf32, #tpu.memory_space<vmem>>, vector<4x8x8xf32>,
    } else {
    }
    return
  }
  func.func @transform_0(%arg0: i32, %arg1: i32, %arg2: i32, %arg3: memref<2xi32, #tpu.memory_space<smem>>) -> (i32, i32, i32) {
    %c0_i32 = arith.constant 0 : i32
    %c0_i32_0 = arith.constant 0 : i32
    return %arg0, %arg1, %c0_i32 : i32, i32, i32
  }
  func.func @transform_1(%arg0: i32, %arg1: i32, %arg2: i32, %arg3: memref<2xi32, #tpu.memory_space<smem>>) -> (i32, i32, i32) {
    %c0_i32 = arith.constant 0 : i32
    %c0_i32_0 = arith.constant 0 : i32
    return %arg0, %arg2, %c0_i32 : i32, i32, i32
  }
  func.func @transform_2(%arg0: i32, %arg1: i32, %arg2: i32, %arg3: memref<2xi32, #tpu.memory_space<smem>>) -> (i32, i32, i32) {
    %c0_i32 = arith.constant 0 : i32
    %c0_i32_0 = arith.constant 0 : i32
    return %arg0, %arg2, %c0_i32 : i32, i32, i32
  }
  func.func @transform_3(%arg0: i32, %arg1: i32, %arg2: i32, %arg3: memref<2xi32, #tpu.memory_space<smem>>) -> (i32, i32, i32) {
    %c0_i32 = arith.constant 0 : i32
    %c0_i32_0 = arith.constant 0 : i32
    return %arg0, %arg1, %c0_i32 : i32, i32, i32
  }
}

module attributes {stable_mosaic.version = 11 : i64} {
  func.func @_qkv_proj_kernel(%arg0: i32, %arg1: i32, %arg2: memref<1x8x16xf32, #tpu.memory_space<vmem>>, %arg3: memref<1x8x16xf32, #tpu.memory_space<vmem>>, %arg4: memref<1x8x16xf32, #tpu.memory_space<vmem>>, %arg5: memref<16x32xf32, #tpu.memory_space<vmem>>, %arg6: memref<16x32xf32, #tpu.memory_space<vmem>>, %arg7: memref<16x32xf32, #tpu.memory_space<vmem>>, %arg8: memref<1x8x32xf32, #tpu.memory_space<vmem>>, %arg9: memref<1x8x32xf32, #tpu.memory_space<vmem>>, %arg10: memref<1x8x32xf32, #tpu.memory_space<vmem>>) attributes {dimension_semantics = [#tpu.dimension_semantics<parallel>, #tpu.dimension_semantics<parallel>], iteration_bounds = array<i64: 2, 1>, scalar_prefetch = 0 : i64, scratch_operands = 0 : i64, tpu.core_type = #tpu.core_type<tc>, window_params = [{transform_indices = @transform_0, window_bounds = array<i64: 1, 8, 16>}, {transform_indices = @transform_1, window_bounds = array<i64: 1, 8, 16>}, {transform_indices = @transform_2, window_bounds = array<i64: 1, 8, 16>}, {pipeline_mode = #tpu.pipeline_mode<synchronous>, transform_indices = @transform_3, window_bounds = array<i64: 16, 32>}, {pipeline_mode = #tpu.pipeline_mode<synchronous>, transform_indices = @transform_4, window_bounds = array<i64: 16, 32>}, {pipeline_mode = #tpu.pipeline_mode<synchronous>, transform_indices = @transform_5, window_bounds = array<i64: 16, 32>}, {transform_indices = @transform_6, window_bounds = array<i64: 1, 8, 32>}, {transform_indices = @transform_7, window_bounds = array<i64: 1, 8, 32>}, {transform_indices = @transform_8, window_bounds = array<i64: 1, 8, 32>}]} {
    %c0 = arith.constant 0 : index
    %c0_0 = arith.constant 0 : index
    %c0_1 = arith.constant 0 : index
    %0 = vector.load %arg2[%c0, %c0_0, %c0_1] : memref<1x8x16xf32, #tpu.memory_space<vmem>>, vector<1x8x16xf32>
    %1 = vector.shape_cast %0 : vector<1x8x16xf32> to vector<8x16xf32>
    %c0_2 = arith.constant 0 : index
    %c0_3 = arith.constant 0 : index
    %2 = vector.load %arg5[%c0_2, %c0_3] : memref<16x32xf32, #tpu.memory_space<vmem>>, vector<16x32xf32>
    %cst = arith.constant dense<0.000000e+00> : vector<8x32xf32>
    %3 = tpu.matmul %1, %2, %cst {dimension_numbers = #tpu.dot_dimension_numbers<[1], [0], [0], [1], [0, 0, 1, 1], [], []>} : vector<8x16xf32>, vector<16x32xf32>, vector<8x32xf32> -> vector<8x32xf32>
    %c0_4 = arith.constant 0 : index
    %c0_5 = arith.constant 0 : index
    %c0_6 = arith.constant 0 : index
    %4 = vector.load %arg8[%c0_4, %c0_5, %c0_6] : memref<1x8x32xf32, #tpu.memory_space<vmem>>, vector<1x8x32xf32>
    %5 = vector.shape_cast %4 : vector<1x8x32xf32> to vector<8x32xf32>
    %6 = vector.shape_cast %3 : vector<8x32xf32> to vector<1x8x32xf32>
    tpu.vector_store %arg8[%c0_4, %c0_5, %c0_6], %6 {strides = array<i32>} : memref<1x8x32xf32, #tpu.memory_space<vmem>>, vector<1x8x32xf32>,
    %c0_7 = arith.constant 0 : index
    %c0_8 = arith.constant 0 : index
    %c0_9 = arith.constant 0 : index
    %7 = vector.load %arg3[%c0_7, %c0_8, %c0_9] : memref<1x8x16xf32, #tpu.memory_space<vmem>>, vector<1x8x16xf32>
    %8 = vector.shape_cast %7 : vector<1x8x16xf32> to vector<8x16xf32>
    %c0_10 = arith.constant 0 : index
    %c0_11 = arith.constant 0 : index
    %9 = vector.load %arg6[%c0_10, %c0_11] : memref<16x32xf32, #tpu.memory_space<vmem>>, vector<16x32xf32>
    %cst_12 = arith.constant dense<0.000000e+00> : vector<8x32xf32>
    %10 = tpu.matmul %8, %9, %cst_12 {dimension_numbers = #tpu.dot_dimension_numbers<[1], [0], [0], [1], [0, 0, 1, 1], [], []>} : vector<8x16xf32>, vector<16x32xf32>, vector<8x32xf32> -> vector<8x32xf32>
    %c0_13 = arith.constant 0 : index
    %c0_14 = arith.constant 0 : index
    %c0_15 = arith.constant 0 : index
    %11 = vector.load %arg9[%c0_13, %c0_14, %c0_15] : memref<1x8x32xf32, #tpu.memory_space<vmem>>, vector<1x8x32xf32>
    %12 = vector.shape_cast %11 : vector<1x8x32xf32> to vector<8x32xf32>
    %13 = vector.shape_cast %10 : vector<8x32xf32> to vector<1x8x32xf32>
    tpu.vector_store %arg9[%c0_13, %c0_14, %c0_15], %13 {strides = array<i32>} : memref<1x8x32xf32, #tpu.memory_space<vmem>>, vector<1x8x32xf32>,
    %c0_16 = arith.constant 0 : index
    %c0_17 = arith.constant 0 : index
    %c0_18 = arith.constant 0 : index
    %14 = vector.load %arg4[%c0_16, %c0_17, %c0_18] : memref<1x8x16xf32, #tpu.memory_space<vmem>>, vector<1x8x16xf32>
    %15 = vector.shape_cast %14 : vector<1x8x16xf32> to vector<8x16xf32>
    %c0_19 = arith.constant 0 : index
    %c0_20 = arith.constant 0 : index
    %16 = vector.load %arg7[%c0_19, %c0_20] : memref<16x32xf32, #tpu.memory_space<vmem>>, vector<16x32xf32>
    %cst_21 = arith.constant dense<0.000000e+00> : vector<8x32xf32>
    %17 = tpu.matmul %15, %16, %cst_21 {dimension_numbers = #tpu.dot_dimension_numbers<[1], [0], [0], [1], [0, 0, 1, 1], [], []>} : vector<8x16xf32>, vector<16x32xf32>, vector<8x32xf32> -> vector<8x32xf32>
    %c0_22 = arith.constant 0 : index
    %c0_23 = arith.constant 0 : index
    %c0_24 = arith.constant 0 : index
    %18 = vector.load %arg10[%c0_22, %c0_23, %c0_24] : memref<1x8x32xf32, #tpu.memory_space<vmem>>, vector<1x8x32xf32>
    %19 = vector.shape_cast %18 : vector<1x8x32xf32> to vector<8x32xf32>
    %20 = vector.shape_cast %17 : vector<8x32xf32> to vector<1x8x32xf32>
    tpu.vector_store %arg10[%c0_22, %c0_23, %c0_24], %20 {strides = array<i32>} : memref<1x8x32xf32, #tpu.memory_space<vmem>>, vector<1x8x32xf32>,
    return
  }
  func.func @transform_0(%arg0: i32, %arg1: i32) -> (i32, i32, i32) {
    %c0_i32 = arith.constant 0 : i32
    %c0_i32_0 = arith.constant 0 : i32
    return %arg0, %arg1, %c0_i32 : i32, i32, i32
  }
  func.func @transform_1(%arg0: i32, %arg1: i32) -> (i32, i32, i32) {
    %c0_i32 = arith.constant 0 : i32
    %c0_i32_0 = arith.constant 0 : i32
    return %arg0, %arg1, %c0_i32 : i32, i32, i32
  }
  func.func @transform_2(%arg0: i32, %arg1: i32) -> (i32, i32, i32) {
    %c0_i32 = arith.constant 0 : i32
    %c0_i32_0 = arith.constant 0 : i32
    return %arg0, %arg1, %c0_i32 : i32, i32, i32
  }
  func.func @transform_3(%arg0: i32, %arg1: i32) -> (i32, i32) {
    %c0_i32 = arith.constant 0 : i32
    %c0_i32_0 = arith.constant 0 : i32
    %c0_i32_1 = arith.constant 0 : i32
    return %c0_i32, %c0_i32_0 : i32, i32
  }
  func.func @transform_4(%arg0: i32, %arg1: i32) -> (i32, i32) {
    %c0_i32 = arith.constant 0 : i32
    %c0_i32_0 = arith.constant 0 : i32
    %c0_i32_1 = arith.constant 0 : i32
    return %c0_i32, %c0_i32_0 : i32, i32
  }
  func.func @transform_5(%arg0: i32, %arg1: i32) -> (i32, i32) {
    %c0_i32 = arith.constant 0 : i32
    %c0_i32_0 = arith.constant 0 : i32
    %c0_i32_1 = arith.constant 0 : i32
    return %c0_i32, %c0_i32_0 : i32, i32
  }
  func.func @transform_6(%arg0: i32, %arg1: i32) -> (i32, i32, i32) {
    %c0_i32 = arith.constant 0 : i32
    %c0_i32_0 = arith.constant 0 : i32
    return %arg0, %arg1, %c0_i32 : i32, i32, i32
  }
  func.func @transform_7(%arg0: i32, %arg1: i32) -> (i32, i32, i32) {
    %c0_i32 = arith.constant 0 : i32
    %c0_i32_0 = arith.constant 0 : i32
    return %arg0, %arg1, %c0_i32 : i32, i32, i32
  }
  func.func @transform_8(%arg0: i32, %arg1: i32) -> (i32, i32, i32) {
    %c0_i32 = arith.constant 0 : i32
    %c0_i32_0 = arith.constant 0 : i32
    return %arg0, %arg1, %c0_i32 : i32, i32, i32
  }
}

module attributes {stable_mosaic.version = 11 : i64} {
  func.func @_linear_kernel(%arg0: i32, %arg1: i32, %arg2: i32, %arg3: memref<16x32xf32, #tpu.memory_space<vmem>>, %arg4: memref<32x32xf32, #tpu.memory_space<vmem>>, %arg5: memref<16x32xf32, #tpu.memory_space<vmem>>, %arg6: memref<16x32xf32, #tpu.memory_space<vmem>>) attributes {dimension_semantics = [#tpu.dimension_semantics<parallel>, #tpu.dimension_semantics<parallel>, #tpu.dimension_semantics<arbitrary>], iteration_bounds = array<i64: 1, 1, 1>, scalar_prefetch = 0 : i64, scratch_operands = 1 : i64, tpu.core_type = #tpu.core_type<tc>, window_params = [{transform_indices = @transform_0, window_bounds = array<i64: 16, 32>}, {transform_indices = @transform_1, window_bounds = array<i64: 32, 32>}, {transform_indices = @transform_2, window_bounds = array<i64: 16, 32>}]} {
    %c0_i32 = arith.constant 0 : i32
    %0 = arith.cmpi eq, %arg2, %c0_i32 : i32
    %1 = arith.extui %0 : i1 to i32
    %c0_i32_0 = arith.constant 0 : i32
    %2 = arith.cmpi ne, %1, %c0_i32_0 : i32
    scf.if %2 {
      %cst_10 = arith.constant 0.000000e+00 : f32
      %12 = vector.broadcast %cst_10 : f32 to vector<16x32xf32>
      %c0_11 = arith.constant 0 : index
      %c0_12 = arith.constant 0 : index
      %13 = vector.load %arg6[%c0_11, %c0_12] : memref<16x32xf32, #tpu.memory_space<vmem>>, vector<16x32xf32>
      tpu.vector_store %arg6[%c0_11, %c0_12], %12 {strides = array<i32>} : memref<16x32xf32, #tpu.memory_space<vmem>>, vector<16x32xf32>,
    } else {
    }
    %c0 = arith.constant 0 : index
    %c0_1 = arith.constant 0 : index
    %3 = vector.load %arg6[%c0, %c0_1] : memref<16x32xf32, #tpu.memory_space<vmem>>, vector<16x32xf32>
    %c0_2 = arith.constant 0 : index
    %c0_3 = arith.constant 0 : index
    %4 = vector.load %arg3[%c0_2, %c0_3] : memref<16x32xf32, #tpu.memory_space<vmem>>, vector<16x32xf32>
    %c0_4 = arith.constant 0 : index
    %c0_5 = arith.constant 0 : index
    %5 = vector.load %arg4[%c0_4, %c0_5] : memref<32x32xf32, #tpu.memory_space<vmem>>, vector<32x32xf32>
    %cst = arith.constant dense<0.000000e+00> : vector<16x32xf32>
    %6 = tpu.matmul %4, %5, %cst {dimension_numbers = #tpu.dot_dimension_numbers<[1], [0], [0], [1], [0, 0, 1, 1], [], []>} : vector<16x32xf32>, vector<32x32xf32>, vector<16x32xf32> -> vector<16x32xf32>
    %7 = arith.addf %3, %6 : vector<16x32xf32>
    %c0_6 = arith.constant 0 : index
    %c0_7 = arith.constant 0 : index
    %8 = vector.load %arg6[%c0_6, %c0_7] : memref<16x32xf32, #tpu.memory_space<vmem>>, vector<16x32xf32>
    tpu.vector_store %arg6[%c0_6, %c0_7], %7 {strides = array<i32>} : memref<16x32xf32, #tpu.memory_space<vmem>>, vector<16x32xf32>,
    %c0_i32_8 = arith.constant 0 : i32
    %9 = arith.cmpi eq, %arg2, %c0_i32_8 : i32
    %10 = arith.extui %9 : i1 to i32
    %c0_i32_9 = arith.constant 0 : i32
    %11 = arith.cmpi ne, %10, %c0_i32_9 : i32
    scf.if %11 {
      %c0_10 = arith.constant 0 : index
      %c0_11 = arith.constant 0 : index
      %12 = vector.load %arg6[%c0_10, %c0_11] : memref<16x32xf32, #tpu.memory_space<vmem>>, vector<16x32xf32>
      %c0_12 = arith.constant 0 : index
      %c0_13 = arith.constant 0 : index
      %13 = vector.load %arg5[%c0_12, %c0_13] : memref<16x32xf32, #tpu.memory_space<vmem>>, vector<16x32xf32>
      tpu.vector_store %arg5[%c0_12, %c0_13], %12 {strides = array<i32>} : memref<16x32xf32, #tpu.memory_space<vmem>>, vector<16x32xf32>,
    } else {
    }
    return
  }
  func.func @transform_0(%arg0: i32, %arg1: i32, %arg2: i32) -> (i32, i32) {
    %c0_i32 = arith.constant 0 : i32
    return %arg0, %arg2 : i32, i32
  }
  func.func @transform_1(%arg0: i32, %arg1: i32, %arg2: i32) -> (i32, i32) {
    %c0_i32 = arith.constant 0 : i32
    return %arg2, %arg1 : i32, i32
  }
  func.func @transform_2(%arg0: i32, %arg1: i32, %arg2: i32) -> (i32, i32) {
    %c0_i32 = arith.constant 0 : i32
    return %arg0, %arg1 : i32, i32
  }
}

</mosaic_0001>

<bundles_post_ra>
// kernel: _lambda_.5
= control target key start
LH: loop header
LB: loop body
LE: loop exit
PB: predicated region body
PF: predicated region fallthrough
CT: control target
= control target key end

     0   :  { %vm16_vm0 = vcmask 261120   ;;  %v191_v6 = vmov 0.0   ;;  %s248_s0 = inlined_call_operand.vmem [shape: f32[16,32], index: 0, kind: input, shape index: {}]   ;;  %s249_s1 = inlined_call_operand.vmem [shape: f32[32,32], index: 1, kind: input, shape index: {}]   ;;  %s250_s2 = inlined_call_operand.hbm [shape: f32[16,32], index: 2, kind: output, shape index: {}]  }
   0x1   :  { %v23_v0 = vld [vmem:[%s249_s1] sm:$0xff]  ;;  %v24_v1 = vld [vmem:[%s249_s1 + $0x8] sm:$0xff]  ;;  %v25_v2 = vld [vmem:[%s249_s1 + $0x10] sm:$0xff]  ;;  %18 = vst.msk [vmem:[#allocation2 + $0x8] sm:$0xff] %vm16_vm0, %v191_v6 }
   0x2   :  { %v155_v3 = vpack.c.bf16 %v24_v1, %v23_v0  ;;  %v26_v4 = vld [vmem:[%s249_s1 + $0x18] sm:$0xff]  ;;  %v21_v5 = vld [vmem:[%s248_s0] sm:$0xff]  ;;  %17 = vst.msk [vmem:[#allocation2] sm:$0xff] %vm16_vm0, %v191_v6 }
   0x3   :  { %v159_v7 = vpack.c.bf16 %v26_v4, %v25_v2  ;;  %152 = vmatprep.mubr.msk.f32.mxu0 %vm16_vm0, %v21_v5 }
   0x4   :  { %7 = vsyncpa [#allocation4], 0  ;;  %156 = vmatprep.subr.bf16.mxu0 %v155_v3  ;;  %v22_v8 = vld [vmem:[%s248_s0 + $0x8] sm:$0xff]  ;;  %s192_s1 = smov [#allocation3]  }
   0x5   :  { %158 = vmatpush3.bf16.msra.mxu0 %v155_v3  ;;  %s125_s21 = sshll.u32 %s192_s1, 4  ;;  %s126_s21 = int_to_ptr.vmem [resolvable:$true] %s125_s21 }
   0x6   :  { %160 = vmatprep.subr.bf16.mxu0 %v159_v7  ;;  %s167_s0 = scalar_lea.vmem %s126_s21, 256  ;;  %p172_p1 = scmp.lt.s32.totalorder %s126_s21, %s126_s21 }
   0x7   :  { %p168_p0 = scmp.ne.s32.totalorder %s126_s21, %s167_s0  ;;  %p173_p2 = scmp.lt.s32.totalorder %s167_s0, %s167_s0 }
   0x8   :  { %v20_v9 = vld [vmem:[#allocation2 + $0x8] sm:$0xff] }
   0x9   :  { %162 = vmatpush3.bf16.msra.mxu0 %v159_v7  ;;  %v19_v10 = vld [vmem:[#allocation2] sm:$0xff]  ;;  %p174_p3 = por %p173_p2, %p172_p1 }
   0xb   :  { %p175_p4 = pnand %p174_p3, %p168_p0 }
   0xc   :  { %153 = vmatmul.mubr.msk.f32.vlgmr.msra.gmra.mrb[0].mxu0 %vm16_vm0, %v22_v8 }
  0xdf   :  { %v154_v11 = vpop.f32.mrb[0].mxu0 }
  0xe0   :  { %v110_v12 = vadd.f32 %v154_v11, %v20_v9  ;;  %v100_v13 = vpop.f32.mrb[1].mxu0 }
  0xe1   :  { %v109_v14 = vadd.f32 %v100_v13, %v19_v10 }
  0xe2   :  { %112 = vst.msk [vmem:[#allocation2 + $0x8] sm:$0xff] %vm16_vm0, %v110_v12 }
  0xe3   :  { %111 = vst.msk [vmem:[#allocation2] sm:$0xff] %vm16_vm0, %v109_v14 }
  0xe9   :  { %v117_v15 = vld [vmem:[#allocation2 + $0x8] sm:$0xff] }
  0xea   :  { %v116_v16 = vld [vmem:[#allocation2] sm:$0xff]  ;;  %119 = vst.msk [vmem:[#allocation3 + $0x8] sm:$0xff] %vm16_vm0, %v117_v15 }
  0xeb   :  { %118 = vst.msk [vmem:[#allocation3] sm:$0xff] %vm16_vm0, %v116_v16 }
  0xec   :  { %178 = shalt.err (!%p175_p4)
}
  0xed   :  { %s179_s24 = scalar_lea.hbm %s250_s2, 256 }
  0xee   :  { %p180_p5 = scmp.ne.s32.totalorder %s250_s2, %s179_s24  ;;  %p183_p6 = scmp.lt.u32.totalorder %s179_s24, %s250_s2 }
  0xf0   :  { %p185_p7 = pnand %p183_p6, %p180_p5 }
  0xf2   :  { %188 = shalt.err (!%p185_p7)
}
  0xf3   :  { %s193_s29 = smov 128   ;;  %s194_s30 = smov 8  }
  0xf4   :  { %131 = dma.vmem_to_hbm [thread:$0]  %s126_s21, 256, %s250_s2, [#allocation4], %s193_s29, %s193_s29, %s194_s30  }
  0xf5   :  { %189 = dma.done.wait [#allocation4], 256  }
  0xf6   :  { %190 = vsyncadd [#allocation4], 4294967040 }
  0xf7   :  { %135 = vsyncpa [#allocation4], 1 }

// kernel: _lambda_.3
= control target key start
LH: loop header
LB: loop body
LE: loop exit
PB: predicated region body
PF: predicated region fallthrough
CT: control target
= control target key end

     0   :  { %14 = vsyncpa [#allocation3], 0  ;;  %s1474_s0 = inlined_call_operand.vmem [shape: f32[2,8,16], index: 0, kind: input, shape index: {}]   ;;  %s1475_s1 = inlined_call_operand.vmem [shape: f32[2,8,16], index: 1, kind: input, shape index: {}]   ;;  %s1476_s2 = inlined_call_operand.hbm [shape: f32[2,8,16], index: 2, kind: input, shape index: {}]   ;;  %s1477_s3 = inlined_call_operand.vmem [shape: f32[16,32], index: 3, kind: input, shape index: {}]   ;;  %s1478_s4 = inlined_call_operand.hbm [shape: f32[16,32], index: 4, kind: input, shape index: {}]   ;;  %s1479_s5 = inlined_call_operand.hbm [shape: f32[16,32], index: 5, kind: input, shape index: {}]   ;;  %s1480_s6 = inlined_call_operand.vmem [shape: f32[2,8,32], index: 6, kind: output, shape index: {0}]   ;;  %s1481_s7 = inlined_call_operand.vmem [shape: f32[2,8,32], index: 7, kind: output, shape index: {1}]   ;;  %s1482_s8 = inlined_call_operand.vmem [shape: f32[2,8,32], index: 8, kind: output, shape index: {2}]  }
   0x1   :  { %16 = vsyncpa [#allocation3 + $0x1], 0 }
   0x2   :  { %17 = vsyncpa [#allocation5], 0  ;;  %s1251_s27 = smov 0   ;;  %s1253_s28 = smov 0  }
   0x3   :  { %s1255_s29 = smov 0   ;;  %s1257_s30 = smov 0  }
   0x4   :  { %s1259_s9 = smov 0   ;;  %s1261_s10 = smov 0  }
   0x5 LB: > { %s914_s11 = sadd.s32 4294967295, %s1196_s10   ;;  %p113_p0 = scmp.ne.s32.totalorder %s1180_s28, %s1176_s27  ;;  %s1196_s10 = sphi %s1261_s10, %s23_s10   ;;  %s1192_s9 = sphi %s1259_s9, %s1499_s9   ;;  %s1188_s30 = sphi %s1257_s30, %s1498_s30   ;;  %s1184_s29 = sphi %s1255_s29, %s1497_s29   ;;  %s1180_s28 = sphi %s1253_s28, %s1496_s28   ;;  %s1176_s27 = sphi %s1251_s27, %s1495_s27  }
   0x6   : > { %p1281_p1 = scmp.eq.s32.totalorder %s914_s11, 0  ;;  %p916_p2 = scmp.ge.s32.totalorder %s1196_s10, 1 }
   0x7   : > { %p271_p3 = scmp.lt.s32.totalorder %s1196_s10, 3  ;;  %s1198_s15 = smov [#allocation4]  }
   0x8   : > { %s1487_s12 = scalar_select %p1281_p1, 1, 0 }
   0x9   : > { %p1289_p4 = por %p1281_p1, %p113_p0  ;;  %p1293_p5 = pnand %p916_p2, %p271_p3 }
   0xa   : > { %s286_s16 = sshll.u32 %s1198_s15, 4  ;;  %s1199_s18 = smov [#allocation6]   ;;  %s287_s16 = int_to_ptr.vmem [resolvable:$true] %s286_s16 }
   0xb   : > { %s1488_s13 = scalar_select %p1289_p4, 1, 0 }
   0xc   : > { %s1489_s14 = scalar_select %p1293_p5, 1, 0 }
   0xd   : > { %p985_p6 = pneg %p1293_p5  ;;  %s299_s19 = sshll.u32 %s1199_s18, 4  ;;  %s1305_s19 = int_to_ptr.vmem [resolvable:$true] %s299_s19 }
   0xe   : > { %s1056_s22 = scalar_lea.hbm %s1478_s4, 256 }
   0xf   : > { %p1301_p7 = pnand %p985_p6, %p1281_p1  ;;  %p1057_p8 = scmp.ne.s32.totalorder %s1478_s4, %s1056_s22 }
  0x10   : > { %p1063_p12 = scmp.lt.u32.totalorder %s1056_s22, %s1478_s4 }
  0x11   : > { %p1058_p9 = pneg %p1301_p7 }
  0x13   : > { %p1059_p10 = pnand %p1058_p9, %p1057_p8 }
  0x15   : > { %p1060_p11 = pneg %p1059_p10 }
  0x17   : > { %p1065_p13 = pnand %p1063_p12, %p1060_p11 }
  0x19   : > { %1068 = shalt.err (!%p1065_p13)
}
  0x1a   : > { %s1069_s27 = scalar_lea.vmem %s287_s16, 256  ;;  %p1077_p6 = scmp.lt.s32.totalorder %s287_s16, %s287_s16 }
  0x1b   : > { %p1070_p0 = scmp.ne.s32.totalorder %s287_s16, %s1069_s27  ;;  %p1078_p1 = scmp.lt.s32.totalorder %s1069_s27, %s1069_s27 }
  0x1d   : > { %p1072_p2 = pnand %p1070_p0, %p1058_p9  ;;  %p1079_p4 = por %p1078_p1, %p1077_p6 }
  0x1f   : > { %p1073_p3 = pneg %p1072_p2 }
  0x21   : > { %p1080_p5 = pnand %p1079_p4, %p1073_p3 }
  0x23   : > { %1083 = shalt.err (!%p1080_p5)
}
  0x24   : > { %s1200_s11 = smov 128   ;;  %s1201_s15 = smov 8  }
  0x25   : > { %988 = dma.hbm_to_vmem [thread:$0]  (!%p1301_p7), %s1478_s4, 256, %s287_s16, [#allocation5], %s1200_s11, %s1200_s11, %s1201_s15  }
  0x26   : > { %s1084_s23 = scalar_lea.hbm %s1479_s5, 256 }
  0x27   : > { %p1085_p8 = scmp.ne.s32.totalorder %s1479_s5, %s1084_s23  ;;  %p1091_p5 = scmp.lt.u32.totalorder %s1084_s23, %s1479_s5 }
  0x29   : > { %p1087_p1 = pnand %p1085_p8, %p1058_p9 }
  0x2b   : > { %p1088_p4 = pneg %p1087_p1 }
  0x2d   : > { %p1093_p10 = pnand %p1091_p5, %p1088_p4 }
  0x2f   : > { %1096 = shalt.err (!%p1093_p10)
}
  0x30   : > { %s1097_s16 = scalar_lea.vmem %s1305_s19, 256  ;;  %p1105_p0 = scmp.lt.s32.totalorder %s1305_s19, %s1305_s19 }
  0x31   : > { %p1098_p11 = scmp.ne.s32.totalorder %s1305_s19, %s1097_s16  ;;  %p1106_p2 = scmp.lt.s32.totalorder %s1097_s16, %s1097_s16 }
  0x33   : > { %p1100_p12 = pnand %p1098_p11, %p1058_p9  ;;  %p1107_p3 = por %p1106_p2, %p1105_p0 }
  0x35   : > { %p1101_p13 = pneg %p1100_p12 }
  0x37   : > { %p1108_p6 = pnand %p1107_p3, %p1101_p13 }
  0x39   : > { %1111 = shalt.err (!%p1108_p6)
}
  0x3a   : > { %991 = dma.hbm_to_vmem [thread:$0]  (!%p1301_p7), %s1479_s5, 256, %s1305_s19, [#allocation5], %s1200_s11, %s1200_s11, %s1201_s15  }
  0x3b   : > { %s35_s21 = sadd.s32 1, %s1192_s9  ;;  %s100_s22 = sadd.s32 1, %s1184_s29 }
  0x3c   : > { %p37_p9 = scmp.ge.s32.totalorder %s35_s21, 2  ;;  %p107_p8 = scmp.ne.s32.totalorder %s1184_s29, %s1180_s28 }
  0x3d   : > { %p108_p1 = scmp.eq.s32.totalorder %s1196_s10, 0  ;;  %p998_p4 = scmp.lt.s32.totalorder %s1196_s10, 2 }
  0x3e   : > { %s1501_s21 = smov (%p37_p9, %s35_s21), 0  ;;  %s333_s17 = sand.u32 1, %s1184_s29  }
  0x3f   : > { %p109_p5 = por %p108_p1, %p107_p8  ;;  %s95_s23 = ssub.s32 %s1192_s9, %s1501_s21 }
  0x40   : > { %p98_p10 = scmp.eq.s32.totalorder %s95_s23, 0  ;;  %s920_s24 = sshll.u32 %s333_s17, 3 }
  0x41   : > { %s921_s25 = sshll.u32 %s1192_s9, 7  ;;  %s337_s15 = scalar_lea.vmem [#allocation2], %s920_s24 }
  0x42   : > { %s1367_s26 = scalar_select %p98_p10, %s1184_s29, %s100_s22  }
  0x43   : > { %s1372_s11 = scalar_lea.hbm %s1476_s2, %s921_s25  ;;  %s345_s16 = sshll.u32 %s337_s15, 4  ;;  %s1374_s16 = int_to_ptr.vmem [resolvable:$true] %s345_s16 }
  0x44   : > { %p1378_p7 = pnand %p998_p4, %p109_p5  ;;  %s334_s20 = scalar_lea.sflag [#allocation3], %s333_s17 }
  0x45   : > { %s1112_s22 = scalar_lea.hbm %s1372_s11, 128  ;;  %s1117_s25 = scalar_lea.hbm %s1476_s2, 256 }
  0x46   : > { %p1113_p11 = scmp.ne.s32.totalorder %s1372_s11, %s1112_s22  ;;  %p1114_p12 = pneg %p1378_p7 }
  0x47   : > { %p1118_p2 = scmp.lt.u32.totalorder %s1372_s11, %s1476_s2  ;;  %p1119_p3 = scmp.lt.u32.totalorder %s1117_s25, %s1112_s22 }
  0x48   : > { %p1115_p13 = pnand %p1114_p12, %p1113_p11  ;;  %p1121_p9 = scmp.lt.u32.totalorder %s1112_s22, %s1372_s11 }
  0x49   : > { %p1120_p6 = por %p1119_p3, %p1118_p2 }
  0x4a   : > { %p1116_p0 = pneg %p1115_p13 }
  0x4b   : > { %p1122_p8 = por %p1121_p9, %p1120_p6 }
  0x4d   : > { %p1123_p1 = pnand %p1122_p8, %p1116_p0 }
  0x4f   : > { %1126 = shalt.err (!%p1123_p1)
}
  0x50   : > { %s1127_s17 = scalar_lea.vmem %s1374_s16, 128  ;;  %s1202_s15 = smov [#allocation2]  }
  0x51   : > { %p1128_p4 = scmp.ne.s32.totalorder %s1374_s16, %s1127_s17  ;;  %s1132_s23 = sshll.u32 %s1202_s15, 4  ;;  %s1133_s23 = int_to_ptr.vmem [resolvable:$false] %s1132_s23 }
  0x52   : > { %s1134_s24 = scalar_lea.vmem %s1133_s23, 256  ;;  %p1135_p11 = scmp.lt.s32.totalorder %s1374_s16, %s1133_s23 }
  0x53   : > { %p1130_p5 = pnand %p1128_p4, %p1114_p12  ;;  %p1136_p13 = scmp.lt.s32.totalorder %s1134_s24, %s1127_s17 }
  0x55   : > { %p1131_p10 = pneg %p1130_p5  ;;  %p1137_p2 = por %p1136_p13, %p1135_p11 }
  0x57   : > { %p1138_p3 = pnand %p1137_p2, %p1131_p10 }
  0x59   : > { %1141 = shalt.err (!%p1138_p3)
}
  0x5a   : > { %995 = dma.hbm_to_vmem [thread:$0]  (!%p1378_p7), %s1372_s11, 128, %s1374_s16, %s334_s20  }
  0x5b   : > { %p1492_p0 = scmp.ne.s32.totalorder %s1489_s14, 0 }
  0x5c   : > { %s356_s22 = sand.u32 (!%p1492_p0), 1, %s1180_s28   ;;  %p1493_p12 = scmp.ne.s32.totalorder (!%p1492_p0), %s1488_s13, 0 }
  0x5d   : > { %354 = sbr.rel (%p1492_p0) target bundleno = 328 (0x148), region = 44  ;;  %s1410_s25 = sshll.u32 (!%p1492_p0), %s356_s22, 3 }
  0x5e   : > { %s357_s27 = scalar_lea.sflag (!%p1492_p0), [#allocation3], %s356_s22  ;;  %s360_s19 = scalar_lea.vmem (!%p1492_p0), [#allocation2], %s1410_s25 }
  0x64   : > { %1167 = dma.done.wait (%p1493_p12), %s357_s27, 128  }
  0x65   : > { %1169 = vsyncadd (%p1493_p12), %s357_s27, 4294967168  ;;  %p1494_p6 = scmp.ne.s32.totalorder %s1487_s12, 0 }
  0x67   : > { %1171 = dma.done.wait (%p1494_p6), [#allocation5], 512  }
  0x68   : > { %1173 = vsyncadd (%p1494_p6), [#allocation5], 4294966784  ;;  %p431_p7 = scmp.lt.s32.totalorder %s1188_s30, 1  ;;  %v1203_v0 = vmov 0.0|0.0   ;;  %vm1204_vm0 = vmmov 0   ;;  %v1205_v1 = vmov 0.0  }
  0x69   : > { %966 = vmatprep.subr.bf16.mxu0 %v1203_v0  ;;  %949 = vmatprep.mubr.msk.f32.mxu0 %vm1204_vm0, %v1205_v1  ;;  %v467_v2 = vld [vmem:[%s1477_s3] sm:$0xff]  ;;  %v468_v3 = vld [vmem:[%s1477_s3 + $0x8] sm:$0xff]  ;;  %v546_v5 = vld [vmem:[#allocation4] sm:$0xff]  ;;  %vm469_vm1 = vcmask 130048   ;;  %vm543_vm2 = vcmask 261120  }
  0x6a   : > { %s1503_s30 = smov (!%p431_p7, %s1188_s30), 1  ;;  %969 = vmatprep.subr.bf16.mxu1 %v1203_v0  ;;  %956 = vmatprep.mubr.msk.f32.mxu1 %vm1204_vm0, %v1205_v1  ;;  %v967_v4 = vpack.c.bf16 %v468_v3, %v467_v2  ;;  %v547_v6 = vld [vmem:[#allocation4 + $0x8] sm:$0xff]  ;;  %v623_v7 = vld [vmem:[#allocation6] sm:$0xff]  ;;  %v624_v9 = vld [vmem:[#allocation6 + $0x8] sm:$0xff] }
  0x6b   : > { %s1425_s13 = sshll.u32 %s1503_s30, 3  ;;  %v970_v8 = vpack.c.bf16 %v547_v6, %v546_v5  ;;  %v973_v11 = vpack.c.bf16 %v624_v9, %v623_v7  ;;  %v622_v13 = vld [vmem:[%s360_s19] sm:$0xff] }
  0x6c   : > { %s437_s17 = scalar_lea.vmem %s1474_s0, %s1425_s13  ;;  %s444_s23 = scalar_lea.vmem %s1475_s1, %s1425_s13  ;;  %968 = vmatpush3.bf16.msra.mxu0 %v967_v4 }
  0x6d   : > { %v466_v10 = vld [vmem:[%s437_s17] sm:$0xff]  ;;  %972 = vmatprep.subr.bf16.mxu0 %v1203_v0  ;;  %971 = vmatpush3.bf16.msra.mxu1 %v970_v8  ;;  %s451_s27 = scalar_lea.vmem %s1480_s6, %s1425_s13  ;;  %s458_s12 = scalar_lea.vmem %s1481_s7, %s1425_s13 }
  0x6e   : > { %v545_v12 = vld [vmem:[%s444_s23] sm:$0xff]  ;;  %s465_s25 = scalar_lea.vmem %s1482_s8, %s1425_s13 }
  0x6f   : > { %950 = vmatmul.mubr.msk.f32.vlgmr.msra.gmra.mrb[0].mxu0 %vm469_vm1, %v466_v10 }
  0x70   : > { %974 = vmatpush3.bf16.msra.mxu0 %v973_v11  ;;  %963 = vmatprep.mubr.msk.f32.mxu0 %vm1204_vm0, %v1205_v1 }
  0x71   : > { %957 = vmatmul.mubr.msk.f32.vlgmr.msra.gmra.mrb[0].mxu1 %vm469_vm1, %v545_v12 }
  0x73   : > { %964 = vmatmul.mubr.msk.f32.vlgmr.msra.gmra.mrb[2].mxu0 %vm469_vm1, %v622_v13 }
 0x142   : > { %v539_v14 = vpop.f32.mrb[0].mxu0 }
 0x143   : > { %544 = vst.msk [vmem:[%s451_s27] sm:$0xff] %vm543_vm2, %v539_v14  ;;  %v951_v15 = vpop.f32.mrb[1].mxu0 }
 0x144   : > { %v617_v16 = vpop.f32.mrb[0].mxu1 }
 0x145   : > { %621 = vst.msk [vmem:[%s458_s12] sm:$0xff] %vm543_vm2, %v617_v16  ;;  %v958_v17 = vpop.f32.mrb[1].mxu1 }
 0x146   : > { %v694_v18 = vpop.f32.mrb[2].mxu0 }
 0x147   : > { %698 = vst.msk [vmem:[%s465_s25] sm:$0xff] %vm543_vm2, %v694_v18  ;;  %v965_v19 = vpop.f32.mrb[3].mxu0 }
 0x148 PF: > { %s23_s10 = sadd.s32 1, %s1196_s10   ;;  %s1495_s27 = smov %s1180_s28 }
 0x149   : > { %p20_p9 = scmp.ge.s32.totalorder %s23_s10, 4   ;;  %s1496_s28 = smov %s1184_s29 }
 0x14a   : > { %s1497_s29 = smov %s1367_s26  ;;  %s1498_s30 = smov %s1192_s9 }
 0x14b   : > { %s1499_s9 = smov %s1501_s21  ;;  %22 = sbr.rel (!%p20_p9) target bundleno = 5 (0x5), region = 122 }
 0x152   :  { %764 = vsyncpa [#allocation3], 1 }
 0x153   :  { %766 = vsyncpa [#allocation3 + $0x1], 1 }
 0x154   :  { %767 = vsyncpa [#allocation5], 1 }

// kernel: _lambda_.4
= control target key start
LH: loop header
LB: loop body
LE: loop exit
PB: predicated region body
PF: predicated region fallthrough
CT: control target
= control target key end

     0   :  { %s1574_s0 = inlined_call_operand.vmem [shape: s32[2], index: 0, kind: input, shape index: {}]   ;;  %s1575_s1 = inlined_call_operand.vmem [shape: f32[8,8,8], index: 1, kind: input, shape index: {}]   ;;  %s1576_s2 = inlined_call_operand.vmem [shape: f32[8,8,8], index: 2, kind: input, shape index: {}]   ;;  %s1577_s3 = inlined_call_operand.vmem [shape: f32[8,8,8], index: 3, kind: input, shape index: {}]   ;;  %s1578_s4 = inlined_call_operand.vmem [shape: f32[8,8,8], index: 4, kind: output, shape index: {}]  }
   0x1   :  { %s9_s17 = sshll.u32 %s1574_s0, 4  ;;  %s10_s17 = int_to_ptr.vmem [resolvable:$true] %s9_s17 }
   0x2   :  { %s1349_s18 = scalar_lea.vmem %s10_s17, 16  ;;  %p1354_p1 = scmp.lt.s32.totalorder %s10_s17, %s10_s17 }
   0x3   :  { %p1350_p0 = scmp.ne.s32.totalorder %s10_s17, %s1349_s18  ;;  %p1355_p2 = scmp.lt.s32.totalorder %s1349_s18, %s1349_s18 }
   0x5   :  { %p1356_p3 = por %p1355_p2, %p1354_p1 }
   0x7   :  { %p1357_p4 = pnand %p1356_p3, %p1350_p0 }
   0x9   :  { %1360 = shalt.err (!%p1357_p4)  }
   0xa   :  { %s1387_s19 = smov [#allocation6]  }
   0xb   :  { %12 = dma.vmem_to_smem %s10_s17, 16, %s1387_s19, [#allocation5] }
   0xc   :  { %1373 = dma.done.wait [#allocation5], 16 }
   0xd   :  { %1374 = vsyncadd [#allocation5], 4294967280 }
   0xe   :  { %14 = sfence }
   0xf   :  { %s1420_s20 = smov 0   ;;  %s1422_s21 = smov 0  }
  0x10   :  { %s1424_s22 = smov 0  }
  0x11 LB: > { %s39_s0 = sadd.s32 1, %s1381_s21  ;;  %p1215_p5 = scmp.ge.s32.totalorder %s1385_s22, 1  ;;  %s1385_s22 = sphi %s1424_s22, %s20_s22   ;;  %s1381_s21 = sphi %s1422_s21, %s1580_s21   ;;  %s1377_s20 = sphi %s1420_s20, %s1579_s20  }
  0x12   : > { %p41_p6 = scmp.ge.s32.totalorder %s39_s0, 2  ;;  %p203_p7 = scmp.lt.s32.totalorder %s1385_s22, 3 }
  0x14   : > { %s1582_s0 = smov (%p41_p6, %s39_s0), 0  ;;  %p204_p8 = pnand %p1215_p5, %p203_p7 }
  0x15   : > { %s1216_s23 = sshll.u32 (!%p204_p8), %s1377_s20, 2  ;;  %vm298_vm0 = vcmask (!%p204_p8), 64512   ;;  %v1388_v0 = vmov (!%p204_p8), 0.0   ;;  %vm1389_vm1 = vmmov (!%p204_p8), 0   ;;  %vm289_vm2 = vcmask (!%p204_p8), 7168   ;;  %s621_s5 = sld [smem:[#allocation6 + %s1377_s20]] (!%p204_p8) }
  0x16   : > { %207 = sbr.rel (%p204_p8) target bundleno = 844 (0x34c), region = 32  ;;  %1254 = vmatprep.subr.mxu0 (!%p204_p8), %v1388_v0  ;;  %p250_p9 = scmp.lt.s32.totalorder (!%p204_p8), %s1216_s23, 7  ;;  %299 = vst.msk [vmem:[#allocation4] sm:$0xff] (!%p204_p8), %vm298_vm0, %v1388_v0  ;;  %300 = vst.msk [vmem:[#allocation4 + $0x8] sm:$0xff] (!%p204_p8), %vm298_vm0, %v1388_v0  ;;  %1256 = vmatprep.mubr.msk.f32.mxu0 (!%p204_p8), %vm1389_vm1, %v1388_v0  ;;  %v1390_v9 = vmov (!%p204_p8), -inf   ;;  %v617_v10 = vlaneseq (!%p204_p8)  ;;  %v1391_v29 = vmov (!%p204_p8), 0  }
  0x17   : > { %301 = vst.msk [vmem:[#allocation4 + $0x10] sm:$0xff] (!%p204_p8), %vm298_vm0, %v1388_v0  ;;  %302 = vst.msk [vmem:[#allocation4 + $0x18] sm:$0xff] (!%p204_p8), %vm298_vm0, %v1388_v0  ;;  %1259 = vmatprep.subr.mxu1 (!%p204_p8), %v1388_v0  ;;  %1261 = vmatprep.mubr.msk.f32.mxu1 (!%p204_p8), %vm1389_vm1, %v1388_v0 }
  0x18   : > { %290 = vst.msk [vmem:[#allocation2] sm:$0xff] (!%p204_p8), %vm289_vm2, %v1390_v9  ;;  %291 = vst.msk [vmem:[#allocation2 + $0x8] sm:$0xff] (!%p204_p8), %vm289_vm2, %v1390_v9  ;;  %v618_v11 = vand.u32 (!%p204_p8), 127, %v617_v10  ;;  %1323 = vset.pattern.permute.xlu0 (!%p204_p8), %v1391_v29  ;;  %1324 = vset.pattern.permute.xlu1 (!%p204_p8), %v1391_v29 }
  0x19   : > { %292 = vst.msk [vmem:[#allocation2 + $0x10] sm:$0xff] (!%p204_p8), %vm289_vm2, %v1390_v9  ;;  %293 = vst.msk [vmem:[#allocation2 + $0x18] sm:$0xff] (!%p204_p8), %vm289_vm2, %v1390_v9 }
  0x1a   : > { %294 = vst.msk [vmem:[#allocation3] sm:$0xff] (!%p204_p8), %vm289_vm2, %v1388_v0  ;;  %295 = vst.msk [vmem:[#allocation3 + $0x8] sm:$0xff] (!%p204_p8), %vm289_vm2, %v1388_v0 }
  0x1b   : > { %296 = vst.msk [vmem:[#allocation3 + $0x10] sm:$0xff] (!%p204_p8), %vm289_vm2, %v1388_v0  ;;  %297 = vst.msk [vmem:[#allocation3 + $0x18] sm:$0xff] (!%p204_p8), %vm289_vm2, %v1388_v0  ;;  %v622_v12 = vstv (!%p204_p8), %s621_s5 }
  0x1c   : > { %vm623_vm3 = vcmp.ge.s32.totalorder (!%p204_p8), %v618_v11, %v622_v12 }
  0x1d   : > { %s1584_s23 = smov (!%p250_p9, %s1216_s23), 7 }
  0x1e   : > { %s1455_s24 = sshll.u32 %s1584_s23, 3 }
  0x1f   : > { %s265_s27 = scalar_lea.vmem %s1576_s2, %s1455_s24  ;;  %s256_s30 = scalar_lea.vmem %s1575_s1, %s1455_s24  ;;  %v1502_v30 = vld [vmem:[#allocation2] sm:$0xff]  ;;  %v1507_v33 = vld [vmem:[#allocation2 + $0x8] sm:$0xff] }
  0x20   : > { %v307_v1 = vld [vmem:[%s265_s27] sm:$0xff]  ;;  %v308_v2 = vld [vmem:[%s265_s27 + $0x8] sm:$0xff]  ;;  %v309_v5 = vld [vmem:[%s265_s27 + $0x10] sm:$0xff]  ;;  %s274_s8 = scalar_lea.vmem %s1577_s3, %s1455_s24  ;;  %s283_s11 = scalar_lea.vmem %s1578_s4, %s1455_s24 }
  0x21   : > { %1255 = vmatpush3.xpose.msk.msra.mxu0 %vm298_vm0, %v307_v1  ;;  %v303_v3 = vld [vmem:[%s256_s30] sm:$0xff]  ;;  %1260 = vmatpush3.xpose.msk.msra.mxu1 %vm298_vm0, %v308_v2  ;;  %v304_v4 = vld [vmem:[%s256_s30 + $0x8] sm:$0xff]  ;;  %v310_v6 = vld [vmem:[%s265_s27 + $0x18] sm:$0xff] }
  0x22   : > { %1264 = vmatprep.subr.mxu0 %v1388_v0  ;;  %1269 = vmatprep.subr.mxu1 %v1388_v0  ;;  %v305_v7 = vld [vmem:[%s256_s30 + $0x10] sm:$0xff]  ;;  %v306_v8 = vld [vmem:[%s256_s30 + $0x18] sm:$0xff]  ;;  %v749_v46 = vld [vmem:[%s274_s8] sm:$0xff] }
  0x23   : > { %v1509_v34 = vld [vmem:[#allocation2 + $0x10] sm:$0xff]  ;;  %v631_v40 = vld [vmem:[#allocation2 + $0x18] sm:$0xff]  ;;  %v750_v47 = vld [vmem:[%s274_s8 + $0x8] sm:$0xff] }
  0x24   : > { %1257 = vmatmul.mubr.msk.f32.vlgmr.msra.gmra.mrb[0].mxu0 %vm298_vm0, %v303_v3  ;;  %1262 = vmatmul.mubr.msk.f32.vlgmr.msra.gmra.mrb[0].mxu1 %vm298_vm0, %v304_v4  ;;  %v751_v59 = vld [vmem:[%s274_s8 + $0x10] sm:$0xff]  ;;  %v752_v63 = vld [vmem:[%s274_s8 + $0x18] sm:$0xff] }
  0x25   : > { %1265 = vmatpush3.xpose.msk.msra.mxu0 %vm298_vm0, %v309_v5  ;;  %1266 = vmatprep.mubr.msk.f32.mxu0 %vm1389_vm1, %v1388_v0 }
  0x26   : > { %1270 = vmatpush3.xpose.msk.msra.mxu1 %vm298_vm0, %v310_v6  ;;  %1271 = vmatprep.mubr.msk.f32.mxu1 %vm1389_vm1, %v1388_v0 }
  0x27   : > { %1274 = vmatprep.subr.mxu0 %v1388_v0  ;;  %1279 = vmatprep.subr.mxu1 %v1388_v0 }
  0x28   : > { %1267 = vmatmul.mubr.msk.f32.vlgmr.msra.gmra.mrb[2].mxu0 %vm298_vm0, %v305_v7 }
  0x29   : > { %1272 = vmatmul.mubr.msk.f32.vlgmr.msra.gmra.mrb[2].mxu1 %vm298_vm0, %v306_v8  ;;  %1276 = vmatprep.mubr.msk.f32.mxu0 %vm1389_vm1, %v1388_v0 }
  0x2a   : > { %1281 = vmatprep.mubr.msk.f32.mxu1 %vm1389_vm1, %v1388_v0  ;;  %1275 = vmatpush3.msra.mxu0 %v749_v46 }
  0x2b   : > { %1284 = vmatprep.subr.mxu0 %v1388_v0  ;;  %1280 = vmatpush3.msra.mxu1 %v750_v47 }
  0x2c   : > { %1289 = vmatprep.subr.mxu1 %v1388_v0 }
  0xf7   : > { %v384_v13 = vpop.f32.mrb[0].mxu0  ;;  %v460_v14 = vpop.f32.mrb[0].mxu1 }
  0xf8   : > { %v624_v15 = vsel %vm623_vm3, -1000000.0, %v384_v13  ;;  %v1258_v16 = vpop.f32.mrb[1].mxu0  ;;  %v625_v17 = vsel %vm623_vm3, -1000000.0, %v460_v14  ;;  %v1263_v18 = vpop.f32.mrb[1].mxu1 }
  0xf9   : > { %v632_v19 = vsel %vm298_vm0, %v624_v15, -inf  ;;  %v635_v20 = vsel %vm298_vm0, %v625_v17, -inf  ;;  %v692_v14 = vld [vmem:[#allocation3] sm:$0xff] }
  0xfa   : > { %633 = vmax.xlane.f32.xlu0 %v632_v19 }
  0xfb   : > { %v536_v21 = vpop.f32.mrb[2].mxu0 }
  0xfc   : > { %v626_v22 = vsel %vm623_vm3, -1000000.0, %v536_v21  ;;  %v1268_v23 = vpop.f32.mrb[3].mxu0  ;;  %v612_v24 = vpop.f32.mrb[2].mxu1  ;;  %v694_v21 = vld [vmem:[#allocation3 + $0x10] sm:$0xff] }
  0xfd   : > { %v627_v25 = vsel %vm623_vm3, -1000000.0, %v612_v24  ;;  %v638_v26 = vsel %vm298_vm0, %v626_v22, -inf  ;;  %v1273_v27 = vpop.f32.mrb[3].mxu1 }
  0xfe   : > { %636 = vmax.xlane.f32.xlu0 %v635_v20  ;;  %639 = vmax.xlane.f32.xlu1 %v638_v26  ;;  %v641_v28 = vsel %vm298_vm0, %v627_v25, -inf }
 0x102   : > { %642 = vmax.xlane.f32.xlu1 %v641_v28 }
 0x187   : > { %v634_v31 = vpop.xlane.xlu0 %633 }
 0x188   : > { %v1505_v32 = vmax.f32 %v1502_v30, %v634_v31 }
 0x18a   : > { %v648_v35 = vsub.f32 %v1502_v30, %v1505_v32  ;;  %1053 = vst.msk [vmem:[#allocation2] sm:$0xff] %vm289_vm2, %v1505_v32  ;;  %662 = vperm.xlu0 %1323, %v1505_v32  }
 0x18b   : > { %v637_v36 = vpop.xlane.xlu0 %636  ;;  %v640_v37 = vpop.xlane.xlu1 %639 }
 0x18c   : > { %v645_v38 = vmax.f32 %v1507_v33, %v637_v36  ;;  %v1518_v39 = vmax.f32 %v1509_v34, %v640_v37  ;;  %v652_v8 = vmul.f32 1.442695, %v648_v35  ;;  %v722_v37 = vld [vmem:[#allocation4 + $0x8] sm:$0xff] }
 0x18e   : > { %v649_v41 = vsub.f32 %v1507_v33, %v645_v38  ;;  %1054 = vst.msk [vmem:[#allocation2 + $0x8] sm:$0xff] %vm289_vm2, %v645_v38  ;;  %667 = vperm.xlu1 %1324, %v645_v38   ;;  %v650_v42 = vsub.f32 %v1509_v34, %v1518_v39  ;;  %1055 = vst.msk [vmem:[#allocation2 + $0x10] sm:$0xff] %vm289_vm2, %v1518_v39  ;;  %v721_v34 = vld [vmem:[#allocation4] sm:$0xff] }
 0x18f   : > { %v643_v43 = vpop.xlane.xlu1 %642 }
 0x190   : > { %v647_v44 = vmax.f32 %v631_v40, %v643_v43  ;;  %v654_v6 = vmul.f32 1.442695, %v649_v41  ;;  %v723_v43 = vld [vmem:[#allocation4 + $0x10] sm:$0xff] }
 0x192   : > { %672 = vperm.xlu1 %1324, %v1518_v39   ;;  %v651_v45 = vsub.f32 %v631_v40, %v647_v44  ;;  %1056 = vst.msk [vmem:[#allocation2 + $0x18] sm:$0xff] %vm289_vm2, %v647_v44 }
 0x194   : > { %v658_v9 = vmul.f32 1.442695, %v651_v45 }
 0x196   : > { %677 = vperm.xlu1 %1324, %v647_v44  }
 0x209   : > { %v663_v48 = vpop.permute.xlu0 %662 }
 0x20a   : > { %v680_v49 = vsub.f32 %v624_v15, %v663_v48 }
 0x20c   : > { %v684_v50 = vmul.f32 1.442695, %v680_v49  ;;  %v724_v49 = vld [vmem:[#allocation4 + $0x18] sm:$0xff] }
 0x20d   : > { %v668_v51 = vpop.permute.xlu1 %667 }
 0x20e   : > { %1325 = vpow2.f32 %v684_v50  ;;  %v681_v52 = vsub.f32 %v625_v17, %v668_v51  ;;  %v693_v17 = vld [vmem:[#allocation3 + $0x8] sm:$0xff] }
 0x210   : > { %v686_v53 = vmul.f32 1.442695, %v681_v52 }
 0x211   : > { %v673_v54 = vpop.permute.xlu1 %672 }
 0x212   : > { %1327 = vpow2.f32 %v686_v53  ;;  %v682_v55 = vsub.f32 %v626_v22, %v673_v54 }
 0x214   : > { %v688_v56 = vmul.f32 1.442695, %v682_v55 }
 0x215   : > { %v678_v57 = vpop.permute.xlu1 %677 }
 0x216   : > { %1329 = vpow2.f32 %v688_v56  ;;  %v683_v58 = vsub.f32 %v627_v25, %v678_v57  ;;  %v695_v25 = vld [vmem:[#allocation3 + $0x18] sm:$0xff] }
 0x218   : > { %v1326_v60 = vpop.eup %1325  ;;  %v690_v61 = vmul.f32 1.442695, %v683_v58 }
 0x219   : > { %1277 = vmatmul.mubr.msk.f32.vlgmr.msra.gmra.mrb[4].mxu0 %vm298_vm0, %v1326_v60  ;;  %v700_v62 = vsel %vm298_vm0, %v1326_v60, 0.0 }
 0x21a   : > { %1331 = vpow2.f32 %v690_v61  ;;  %701 = vadd.xlane.f32.xlu1 %v700_v62  ;;  %1285 = vmatpush3.msra.mxu0 %v751_v59 }
 0x21b   : > { %1286 = vmatprep.mubr.msk.f32.mxu0 %vm1389_vm1, %v1388_v0  ;;  %1333 = vpow2.f32 %v654_v6 }
 0x21c   : > { %v1328_v1 = vpop.eup %1327  ;;  %1335 = vpow2.f32 %v652_v8 }
 0x21d   : > { %1282 = vmatmul.mubr.msk.f32.vlgmr.msra.gmra.mrb[4].mxu1 %vm298_vm0, %v1328_v1  ;;  %v703_v2 = vsel %vm298_vm0, %v1328_v1, 0.0  ;;  %1337 = vpow2.f32 %v658_v9 }
 0x21e   : > { %704 = vadd.xlane.f32.xlu0 %v703_v2  ;;  %1290 = vmatpush3.msra.mxu1 %v752_v63 }
 0x21f   : > { %1291 = vmatprep.mubr.msk.f32.mxu1 %vm1389_vm1, %v1388_v0  ;;  %v656_v0 = vmul.f32 1.442695, %v650_v42 }
 0x220   : > { %v1330_v3 = vpop.eup %1329 }
 0x221   : > { %1287 = vmatmul.mubr.msk.f32.vlgmr.msra.gmra.mrb[6].mxu0 %vm298_vm0, %v1330_v3  ;;  %v706_v4 = vsel %vm298_vm0, %v1330_v3, 0.0  ;;  %1339 = vpow2.f32 %v656_v0 }
 0x222   : > { %707 = vadd.xlane.f32.xlu1 %v706_v4 }
 0x224   : > { %v1332_v5 = vpop.eup %1331 }
 0x225   : > { %1292 = vmatmul.mubr.msk.f32.vlgmr.msra.gmra.mrb[6].mxu1 %vm298_vm0, %v1332_v5  ;;  %v709_v7 = vsel %vm298_vm0, %v1332_v5, 0.0  ;;  %v1334_v10 = vpop.eup %1333 }
 0x226   : > { %710 = vadd.xlane.f32.xlu1 %v709_v7  ;;  %v1336_v11 = vpop.eup %1335  ;;  %v697_v19 = vmul.f32 %v1334_v10, %v693_v17 }
 0x227   : > { %v1338_v12 = vpop.eup %1337  ;;  %v696_v15 = vmul.f32 %v1336_v11, %v692_v14 }
 0x228   : > { %v699_v28 = vmul.f32 %v1338_v12, %v695_v25 }
 0x22b   : > { %v1340_v13 = vpop.eup %1339 }
 0x22c   : > { %v698_v23 = vmul.f32 %v1340_v13, %v694_v21 }
 0x234   : > { %732 = vperm.xlu0 %1323, %v1334_v10  }
 0x237   : > { %727 = vperm.xlu1 %1324, %v1336_v11  }
 0x238   : > { %742 = vperm.xlu0 %1323, %v1338_v12  }
 0x23b   : > { %737 = vperm.xlu1 %1324, %v1340_v13  }
 0x2a7   : > { %v702_v16 = vpop.xlane.xlu1 %701 }
 0x2a8   : > { %v712_v18 = vadd.f32 %v702_v16, %v696_v15 }
 0x2aa   : > { %717 = vst.msk [vmem:[#allocation3] sm:$0xff] %vm289_vm2, %v712_v18 }
 0x2ab   : > { %v705_v20 = vpop.xlane.xlu0 %704 }
 0x2ac   : > { %v713_v22 = vadd.f32 %v705_v20, %v697_v19 }
 0x2ae   : > { %718 = vst.msk [vmem:[#allocation3 + $0x8] sm:$0xff] %vm289_vm2, %v713_v22 }
 0x2af   : > { %v708_v24 = vpop.xlane.xlu1 %707 }
 0x2b0   : > { %v714_v26 = vadd.f32 %v708_v24, %v698_v23 }
 0x2b1   : > { %v1064_v27 = vld [vmem:[#allocation3] sm:$0xff] }
 0x2b2   : > { %719 = vst.msk [vmem:[#allocation3 + $0x10] sm:$0xff] %vm289_vm2, %v714_v26  ;;  %1070 = vperm.xlu1 %1324, %v1064_v27  }
 0x2b3   : > { %v711_v29 = vpop.xlane.xlu1 %710  ;;  %v733_v38 = vpop.permute.xlu0 %732 }
 0x2b4   : > { %v715_v30 = vadd.f32 %v711_v29, %v699_v28  ;;  %v746_v42 = vmul.f32 %v733_v38, %v722_v37 }
 0x2b5   : > { %v1065_v31 = vld [vmem:[#allocation3 + $0x8] sm:$0xff] }
 0x2b6   : > { %720 = vst.msk [vmem:[#allocation3 + $0x18] sm:$0xff] %vm289_vm2, %v715_v30  ;;  %1075 = vperm.xlu1 %1324, %v1065_v31  }
 0x2b7   : > { %v728_v35 = vpop.permute.xlu1 %727  ;;  %v743_v50 = vpop.permute.xlu0 %742 }
 0x2b8   : > { %v745_v36 = vmul.f32 %v728_v35, %v721_v34  ;;  %v748_v54 = vmul.f32 %v743_v50, %v724_v49 }
 0x2b9   : > { %v1066_v32 = vld [vmem:[#allocation3 + $0x10] sm:$0xff] }
 0x2ba   : > { %1080 = vperm.xlu1 %1324, %v1066_v32  }
 0x2bb   : > { %v738_v44 = vpop.permute.xlu1 %737 }
 0x2bc   : > { %v747_v48 = vmul.f32 %v738_v44, %v723_v43 }
 0x2bd   : > { %v1067_v33 = vld [vmem:[#allocation3 + $0x18] sm:$0xff] }
 0x2be   : > { %1085 = vperm.xlu0 %1323, %v1067_v33  }
 0x2ec   : > { %v822_v39 = vpop.f32.mrb[4].mxu0 }
 0x2ed   : > { %v1045_v40 = vadd.f32 %v822_v39, %v745_v36  ;;  %v1278_v41 = vpop.f32.mrb[5].mxu0 }
 0x2ef   : > { %1049 = vst.msk [vmem:[#allocation4] sm:$0xff] %vm298_vm0, %v1045_v40 }
 0x2f0   : > { %v895_v45 = vpop.f32.mrb[4].mxu1 }
 0x2f1   : > { %v1046_v46 = vadd.f32 %v895_v45, %v746_v42  ;;  %v1283_v47 = vpop.f32.mrb[5].mxu1 }
 0x2f3   : > { %1050 = vst.msk [vmem:[#allocation4 + $0x8] sm:$0xff] %vm298_vm0, %v1046_v46 }
 0x2f4   : > { %v968_v51 = vpop.f32.mrb[6].mxu0 }
 0x2f5   : > { %v1047_v52 = vadd.f32 %v968_v51, %v747_v48  ;;  %v1288_v53 = vpop.f32.mrb[7].mxu0 }
 0x2f6   : > { %v1060_v62 = vld [vmem:[#allocation4] sm:$0xff] }
 0x2f7   : > { %1051 = vst.msk [vmem:[#allocation4 + $0x10] sm:$0xff] %vm298_vm0, %v1047_v52 }
 0x2f8   : > { %v1041_v55 = vpop.f32.mrb[6].mxu1 }
 0x2f9   : > { %v1048_v56 = vadd.f32 %v1041_v55, %v748_v54  ;;  %v1293_v57 = vpop.f32.mrb[7].mxu1 }
 0x2fa   : > { %v1061_v3 = vld [vmem:[#allocation4 + $0x8] sm:$0xff] }
 0x2fb   : > { %1052 = vst.msk [vmem:[#allocation4 + $0x18] sm:$0xff] %vm298_vm0, %v1048_v56 }
 0x2fe   : > { %v1062_v6 = vld [vmem:[#allocation4 + $0x10] sm:$0xff] }
 0x302   : > { %v1063_v9 = vld [vmem:[#allocation4 + $0x18] sm:$0xff] }
 0x331   : > { %v1071_v58 = vpop.permute.xlu1 %1070 }
 0x332   : > { %1341 = vrcp.f32 %v1071_v58 }
 0x335   : > { %v1076_v59 = vpop.permute.xlu1 %1075 }
 0x336   : > { %1343 = vrcp.f32 %v1076_v59 }
 0x339   : > { %v1081_v60 = vpop.permute.xlu1 %1080 }
 0x33a   : > { %1345 = vrcp.f32 %v1081_v60 }
 0x33c   : > { %v1342_v61 = vpop.eup %1341 }
 0x33d   : > { %v1089_v63 = vmul.f32 %v1342_v61, %v1060_v62  ;;  %v1086_v1 = vpop.permute.xlu0 %1085 }
 0x33e   : > { %1347 = vrcp.f32 %v1086_v1 }
 0x33f   : > { %1096 = vst.msk [vmem:[%s283_s11] sm:$0xff] %vm298_vm0, %v1089_v63 }
 0x340   : > { %v1344_v2 = vpop.eup %1343 }
 0x341   : > { %v1091_v4 = vmul.f32 %v1344_v2, %v1061_v3 }
 0x343   : > { %1097 = vst.msk [vmem:[%s283_s11 + $0x8] sm:$0xff] %vm298_vm0, %v1091_v4 }
 0x344   : > { %v1346_v5 = vpop.eup %1345 }
 0x345   : > { %v1093_v7 = vmul.f32 %v1346_v5, %v1062_v6 }
 0x347   : > { %1098 = vst.msk [vmem:[%s283_s11 + $0x10] sm:$0xff] %vm298_vm0, %v1093_v7 }
 0x348   : > { %v1348_v8 = vpop.eup %1347 }
 0x349   : > { %v1095_v0 = vmul.f32 %v1348_v8, %v1063_v9 }
 0x34b   : > { %1099 = vst.msk [vmem:[%s283_s11 + $0x18] sm:$0xff] %vm298_vm0, %v1095_v0 }
 0x34c PF: > { %s20_s22 = sadd.s32 1, %s1385_s22   ;;  %s1579_s20 = smov %s1381_s21 }
 0x34d   : > { %p17_p10 = scmp.ge.s32.totalorder %s20_s22, 4   ;;  %s1580_s21 = smov %s1582_s0 }
 0x34f   :  { %19 = sbr.rel (!%p17_p10) target bundleno = 17 (0x11), region = 76 }

</bundles_post_ra>
